<compile_context>
chip_gen: v6e
topology: v6e:2x2x1
jax: 0.10.0
libtpu: 0.0.40
codegen_flags: <defaults>
</compile_context>

<pallas_src>
import functools

import jax
import jax.numpy as jnp
from jax import lax
from jax.experimental import pallas as pl
from jax.experimental.pallas import tpu as pltpu

_INV_SQRT2 = 0.7071067811865476


def _gelu_exact(h_f32, compute_dtype):
    """Exact (erf-based) GELU evaluated in `compute_dtype` (fuses the cast for fc2)."""
    h = h_f32.astype(compute_dtype)
    return 0.5 * h * (1.0 + lax.erf(h * _INV_SQRT2))


# ----------------------------------------------------------------------------- kernels
def _mlp_kernel_resident(x_ref, w1_ref, b1_ref, w2_ref, b2_ref, o_ref, *, gelu_dtype):
    # x_ref:(tm,D)  w1_ref:(D,H)  b1_ref:(1,H)  w2_ref:(H,O)  b2_ref:(1,O)  o_ref:(tm,O)
    x = x_ref[...]
    w1 = w1_ref[...]
    w2 = w2_ref[...]
    b1 = b1_ref[...].astype(jnp.float32)
    b2 = b2_ref[...].astype(jnp.float32)

    # fc1 on the MXU: native-dtype operands, f32 accumulation.
    h = jnp.dot(x, w1, preferred_element_type=jnp.float32) + b1
    # Exact erf GELU in gelu_dtype (bf16 on v6e/v7x), already in the fc2 operand dtype.
    h = _gelu_exact(h, gelu_dtype).astype(w2.dtype)
    # dropout: identity (eval mode)
    y = jnp.dot(h, w2, preferred_element_type=jnp.float32) + b2
    # dropout: identity (eval mode)
    o_ref[...] = y.astype(o_ref.dtype)


def _mlp_kernel_streamed(x_ref, w1_ref, b1_ref, w2_ref, b2_ref, o_ref, acc_ref,
                         *, gelu_dtype):
    # grid = (M tiles, H tiles); H axis is the fc2 reduction ("arbitrary").
    # x_ref:(tm,D)  w1_ref:(D,th)  b1_ref:(1,th)  w2_ref:(th,O)  b2_ref:(1,O)
    # o_ref:(tm,O)  acc_ref: f32 VMEM scratch (tm,O)
    hi = pl.program_id(1)

    @pl.when(hi == 0)
    def _():
        acc_ref[...] = jnp.zeros_like(acc_ref)

    h = jnp.dot(x_ref[...], w1_ref[...], preferred_element_type=jnp.float32)
    h = h + b1_ref[...].astype(jnp.float32)
    h = _gelu_exact(h, gelu_dtype).astype(w2_ref.dtype)
    # dropout: identity (eval mode)
    acc_ref[...] += jnp.dot(h, w2_ref[...], preferred_element_type=jnp.float32)

    @pl.when(hi == pl.num_programs(1) - 1)
    def _():
        o_ref[...] = (acc_ref[...] + b2_ref[...].astype(jnp.float32)).astype(o_ref.dtype)
        # dropout: identity (eval mode)


# ----------------------------------------------------------------------------- wrapper
def _round_up(x, m):
    return (x + m - 1) // m * m


def _vmem_capacity_bytes():
    try:
        return int(pltpu.get_tpu_info().vmem_capacity_bytes)
    except Exception:
        return 64 << 20  # conservative: v7x per-TensorCore VMEM


@functools.partial(jax.jit, static_argnames=("tm", "force_streamed"))
def feed_forward(x, w1_t, b1, w2_t, b2, *, tm=None, force_streamed=False):
    """x: (B, N, dim). w1_t: (dim, hidden). b1: (hidden,). w2_t: (hidden, out). b2: (out,)."""
    B, N, D = x.shape
    H = w1_t.shape[1]
    O = w2_t.shape[1]
    M = B * N

    x_isz = jnp.dtype(x.dtype).itemsize
    w_isz = jnp.dtype(w1_t.dtype).itemsize

    # Lane-dense output: pad O to a multiple of 128 so the writeback uses unmasked vst.
    O_pad = _round_up(O, 128)
    if O_pad != O:
        w2_t = jnp.pad(w2_t, ((0, 0), (0, O_pad - O)))
        b2 = jnp.pad(b2, ((0, O_pad - O),))

    # Row tile: 256 matches the 256-wide v6e/v7x MXU; drop to 128 when the grid would
    # otherwise have < 2 steps (megacore balance on v7x, less padding waste).
    if tm is None:
        tm = 256 if pl.cdiv(M, 256) >= 2 else 128

    xf = x.reshape(M, D)
    M_pad = _round_up(M, tm)
    if M_pad != M:
        xf = jnp.pad(xf, ((0, M_pad - M), (0, 0)))
    grid_m = M_pad // tm

    b1_2d = b1.reshape(1, H)
    b2_2d = b2.reshape(1, O_pad)

    # GELU compute dtype: bf16 for bf16 activations (halves VALU work on v6e/v7x for the
    # erf polynomial), f32 otherwise.  (v5e has no bf16 VALU; its workloads keep f32 here.)
    gelu_dtype = jnp.bfloat16 if x.dtype == jnp.bfloat16 else jnp.float32

    vmem_cap = _vmem_capacity_bytes()          # per-TensorCore capacity (each TC holds its
    budget = vmem_cap - (8 << 20)              # own copy of resident weights); headroom.

    # Resident-weights residency estimate (per TensorCore).
    weights_bytes = (D * H + H * O_pad) * w_isz
    vmem_resident = (2 * tm * D * x_isz          # x tile (double-buffered)
                     + 2 * tm * O_pad * x_isz    # out tile (double-buffered)
                     + weights_bytes             # W1/W2, single-buffered
                     + (H + O_pad) * w_isz       # biases
                     + tm * H * 4                # f32 fc1 accumulator / GELU intermediate
                     + tm * H * x_isz            # native-dtype h fed to fc2
                     + tm * O_pad * 4)           # f32 fc2 result before the output cast

    # Streamed (H-tiled) variant: needed on v7x (64 MiB/TC) for large H / f32 weights,
    # and useful for tiny grids to overlap the weight DMA with compute.
    th = next((t for t in (512, 256, 128) if H % t == 0), None)
    use_streamed = bool(force_streamed)
    if th is not None and not use_streamed:
        use_streamed = (vmem_resident > (budget * 3) // 5) or (
            grid_m <= 2 and weights_bytes > (4 << 20))
    if th is None:
        use_streamed = False

    if use_streamed:
        grid_h = H // th
        vmem_est = (2 * tm * D * x_isz + 2 * tm * O_pad * x_isz
                    + 2 * (D * th + th * O_pad) * w_isz    # double-buffered weight blocks
                    + 2 * (th + O_pad) * w_isz             # bias blocks
                    + tm * O_pad * 4                       # f32 accumulator scratch
                    + tm * th * 4 + tm * th * x_isz + tm * O_pad * 4)
    else:
        grid_h = 1
        vmem_est = vmem_resident

    vmem_limit = None
    if vmem_est + (4 << 20) > (32 << 20):
        # Raise above the 32 MiB scoped default, but never past physical capacity.
        vmem_limit = min(int(vmem_est * 1.25) + (4 << 20), vmem_cap - (2 << 20))

    cost = pl.CostEstimate(
        flops=2 * M_pad * D * H + 2 * M_pad * H * O_pad,
        transcendentals=M_pad * H,
        bytes_accessed=(M_pad * D + M_pad * O_pad) * x_isz
        + (D * H + H * O_pad + H + O_pad) * w_isz,
    )

    if use_streamed:
        kernel = functools.partial(_mlp_kernel_streamed, gelu_dtype=gelu_dtype)
        grid_spec = pltpu.PrefetchScalarGridSpec(
            num_scalar_prefetch=0,
            grid=(grid_m, grid_h),
            in_specs=[
                pl.BlockSpec((tm, D), lambda i, h: (i, 0)),          # x: resident over h
                pl.BlockSpec((D, th), lambda i, h: (0, h)),          # W1 column block
                pl.BlockSpec((1, th), lambda i, h: (0, h)),          # b1 block
                pl.BlockSpec((th, O_pad), lambda i, h: (h, 0)),      # W2 row block
                pl.BlockSpec((1, O_pad), lambda i, h: (0, 0)),       # b2
            ],
            out_specs=pl.BlockSpec((tm, O_pad), lambda i, h: (i, 0)),
            scratch_shapes=[pltpu.VMEM((tm, O_pad), jnp.float32)],
        )
        dim_sems = ("parallel", "arbitrary")
    else:
        kernel = functools.partial(_mlp_kernel_resident, gelu_dtype=gelu_dtype)
        grid_spec = pltpu.PrefetchScalarGridSpec(
            num_scalar_prefetch=0,
            grid=(grid_m,),
            in_specs=[
                # Token tile streams over the grid (default double-buffering).
                pl.BlockSpec((tm, D), lambda i: (i, 0)),
                # Weights/biases: constant index maps, single VMEM copy.
                pl.BlockSpec((D, H), lambda i: (0, 0), pipeline_mode=pl.Buffered(1)),
                pl.BlockSpec((1, H), lambda i: (0, 0), pipeline_mode=pl.Buffered(1)),
                pl.BlockSpec((H, O_pad), lambda i: (0, 0), pipeline_mode=pl.Buffered(1)),
                pl.BlockSpec((1, O_pad), lambda i: (0, 0), pipeline_mode=pl.Buffered(1)),
            ],
            out_specs=pl.BlockSpec((tm, O_pad), lambda i: (i, 0)),
        )
        dim_sems = ("parallel",)

    out = pl.pallas_call(
        kernel,
        out_shape=jax.ShapeDtypeStruct((M_pad, O_pad), x.dtype),
        grid_spec=grid_spec,
        compiler_params=pltpu.CompilerParams(
            dimension_semantics=dim_sems,
            vmem_limit_bytes=vmem_limit,
        ),
        cost_estimate=cost,
    )(xf, w1_t, b1_2d, w2_t, b2_2d)

    return out[:M, :O].reshape(B, N, O)


# ----------------------------------------------------------------------------- reference
def _reference(x, w1_t, b1, w2_t, b2):
    h = jnp.dot(x, w1_t) + b1
    h = 0.5 * h * (1.0 + lax.erf(h * _INV_SQRT2))
    return jnp.dot(h, w2_t) + b2


def _check(name, y, y_ref, atol, rtol):
    yf = y.astype(jnp.float32)
    rf = y_ref.astype(jnp.float32)
    err = jnp.max(jnp.abs(yf - rf))
    assert jnp.allclose(yf, rf, atol=atol, rtol=rtol), f"{name}: max err {err}"


if __name__ == "__main__":
    key = jax.random.PRNGKey(0)

    # ---- 1) resident-weights path, f32, small ViT-like shapes ----
    B, N, dim, hidden = 2, 8, 32, 64
    out_dim = dim  # out_dim=None -> dim
    kx, kw1, kb1, kw2, kb2, k2 = jax.random.split(key, 6)
    x = jax.random.normal(kx, (B, N, dim), dtype=jnp.float32)
    w1_t = jax.random.normal(kw1, (dim, hidden), dtype=jnp.float32) * 0.05
    b1 = jax.random.normal(kb1, (hidden,), dtype=jnp.float32) * 0.05
    w2_t = jax.random.normal(kw2, (hidden, out_dim), dtype=jnp.float32) * 0.05
    b2 = jax.random.normal(kb2, (out_dim,), dtype=jnp.float32) * 0.05

    y = jax.block_until_ready(feed_forward(x, w1_t, b1, w2_t, b2))
    assert y.shape == (B, N, out_dim), y.shape
    _check("f32 resident", y, _reference(x, w1_t, b1, w2_t, b2), atol=5e-3, rtol=5e-3)

    # ---- 2) resident-weights path, bf16 (production MXU config + bf16 GELU) ----
    xb, w1b, b1b, w2b, b2b = (t.astype(jnp.bfloat16) for t in (x, w1_t, b1, w2_t, b2))
    yb = jax.block_until_ready(feed_forward(xb, w1b, b1b, w2b, b2b))
    assert yb.shape == (B, N, out_dim), yb.shape
    yb_ref = _reference(*(t.astype(jnp.float32) for t in (xb, w1b, b1b, w2b, b2b)))
    _check("bf16 resident", yb, yb_ref, atol=3e-2, rtol=3e-2)

    # ---- 3) streamed (H-tiled) weights path, f32, forced ----
    B2, N2, dim2, hidden2, out2 = 1, 256, 128, 1024, 128
    ka, kb_, kc, kd, ke = jax.random.split(k2, 5)
    x2 = jax.random.normal(ka, (B2, N2, dim2), dtype=jnp.float32)
    w1_2 = jax.random.normal(kb_, (dim2, hidden2), dtype=jnp.float32) * 0.02
    b1_2 = jax.random.normal(kc, (hidden2,), dtype=jnp.float32) * 0.02
    w2_2 = jax.random.normal(kd, (hidden2, out2), dtype=jnp.float32) * 0.02
    b2_2 = jax.random.normal(ke, (out2,), dtype=jnp.float32) * 0.02

    y2 = jax.block_until_ready(
        feed_forward(x2, w1_2, b1_2, w2_2, b2_2, force_streamed=True))
    assert y2.shape == (B2, N2, out2), y2.shape
    _check("f32 streamed", y2, _reference(x2, w1_2, b1_2, w2_2, b2_2),
           atol=5e-3, rtol=5e-3)

    print("KERNEL_OK")
</pallas_src>

<mosaic_0001>
module attributes {stable_mosaic.version = 11 : i64} {
  func.func @_mlp_kernel_resident(%arg0: i32, %arg1: memref<128x32xf32, #tpu.memory_space<vmem>>, %arg2: memref<32x64xf32, #tpu.memory_space<vmem>>, %arg3: memref<1x64xf32, #tpu.memory_space<vmem>>, %arg4: memref<64x128xf32, #tpu.memory_space<vmem>>, %arg5: memref<1x128xf32, #tpu.memory_space<vmem>>, %arg6: memref<128x128xf32, #tpu.memory_space<vmem>>) attributes {dimension_semantics = [#tpu.dimension_semantics<parallel>], iteration_bounds = array<i64: 1>, scalar_prefetch = 0 : i64, scratch_operands = 0 : i64, tpu.core_type = #tpu.core_type<tc>, window_params = [{transform_indices = @transform_0, window_bounds = array<i64: 128, 32>}, {pipeline_mode = #tpu.pipeline_mode<synchronous>, transform_indices = @transform_1, window_bounds = array<i64: 32, 64>}, {pipeline_mode = #tpu.pipeline_mode<synchronous>, transform_indices = @transform_2, window_bounds = array<i64: 1, 64>}, {pipeline_mode = #tpu.pipeline_mode<synchronous>, transform_indices = @transform_3, window_bounds = array<i64: 64, 128>}, {pipeline_mode = #tpu.pipeline_mode<synchronous>, transform_indices = @transform_4, window_bounds = array<i64: 1, 128>}, {transform_indices = @transform_5, window_bounds = array<i64: 128, 128>}]} {
    %c0 = arith.constant 0 : index
    %c0_0 = arith.constant 0 : index
    %0 = vector.load %arg1[%c0, %c0_0] : memref<128x32xf32, #tpu.memory_space<vmem>>, vector<128x32xf32>
    %c0_1 = arith.constant 0 : index
    %c0_2 = arith.constant 0 : index
    %1 = vector.load %arg2[%c0_1, %c0_2] : memref<32x64xf32, #tpu.memory_space<vmem>>, vector<32x64xf32>
    %c0_3 = arith.constant 0 : index
    %c0_4 = arith.constant 0 : index
    %2 = vector.load %arg4[%c0_3, %c0_4] : memref<64x128xf32, #tpu.memory_space<vmem>>, vector<64x128xf32>
    %c0_5 = arith.constant 0 : index
    %c0_6 = arith.constant 0 : index
    %3 = vector.load %arg3[%c0_5, %c0_6] : memref<1x64xf32, #tpu.memory_space<vmem>>, vector<1x64xf32>
    %c0_7 = arith.constant 0 : index
    %c0_8 = arith.constant 0 : index
    %4 = vector.load %arg5[%c0_7, %c0_8] : memref<1x128xf32, #tpu.memory_space<vmem>>, vector<1x128xf32>
    %cst = arith.constant dense<0.000000e+00> : vector<128x64xf32>
    %5 = tpu.matmul %0, %1, %cst {dimension_numbers = #tpu.dot_dimension_numbers<[1], [0], [0], [1], [0, 0, 1, 1], [], []>} : vector<128x32xf32>, vector<32x64xf32>, vector<128x64xf32> -> vector<128x64xf32>
    %6 = vector.broadcast %3 : vector<1x64xf32> to vector<128x64xf32>
    %7 = arith.addf %5, %6 : vector<128x64xf32>
    %cst_9 = arith.constant 5.000000e-01 : f32
    %8 = vector.broadcast %cst_9 : f32 to vector<128x64xf32>
    %9 = arith.mulf %8, %7 : vector<128x64xf32>
    %cst_10 = arith.constant 0.707106769 : f32
    %10 = vector.broadcast %cst_10 : f32 to vector<128x64xf32>
    %11 = arith.mulf %7, %10 : vector<128x64xf32>
    %12 = math.erf %11 : vector<128x64xf32>
    %cst_11 = arith.constant 1.000000e+00 : f32
    %13 = vector.broadcast %cst_11 : f32 to vector<128x64xf32>
    %14 = arith.addf %13, %12 : vector<128x64xf32>
    %15 = arith.mulf %9, %14 : vector<128x64xf32>
    %cst_12 = arith.constant dense<0.000000e+00> : vector<128x128xf32>
    %16 = tpu.matmul %15, %2, %cst_12 {dimension_numbers = #tpu.dot_dimension_numbers<[1], [0], [0], [1], [0, 0, 1, 1], [], []>} : vector<128x64xf32>, vector<64x128xf32>, vector<128x128xf32> -> vector<128x128xf32>
    %17 = vector.broadcast %4 : vector<1x128xf32> to vector<128x128xf32>
    %18 = arith.addf %16, %17 : vector<128x128xf32>
    %c0_13 = arith.constant 0 : index
    %c0_14 = arith.constant 0 : index
    %19 = vector.load %arg6[%c0_13, %c0_14] : memref<128x128xf32, #tpu.memory_space<vmem>>, vector<128x128xf32>
    tpu.vector_store %arg6[%c0_13, %c0_14], %18 {strides = array<i32>} : memref<128x128xf32, #tpu.memory_space<vmem>>, vector<128x128xf32>,
    return
  }
  func.func @transform_0(%arg0: i32) -> (i32, i32) {
    %c0_i32 = arith.constant 0 : i32
    %c0_i32_0 = arith.constant 0 : i32
    return %arg0, %c0_i32 : i32, i32
  }
  func.func @transform_1(%arg0: i32) -> (i32, i32) {
    %c0_i32 = arith.constant 0 : i32
    %c0_i32_0 = arith.constant 0 : i32
    %c0_i32_1 = arith.constant 0 : i32
    return %c0_i32, %c0_i32_0 : i32, i32
  }
  func.func @transform_2(%arg0: i32) -> (i32, i32) {
    %c0_i32 = arith.constant 0 : i32
    %c0_i32_0 = arith.constant 0 : i32
    %c0_i32_1 = arith.constant 0 : i32
    return %c0_i32, %c0_i32_0 : i32, i32
  }
  func.func @transform_3(%arg0: i32) -> (i32, i32) {
    %c0_i32 = arith.constant 0 : i32
    %c0_i32_0 = arith.constant 0 : i32
    %c0_i32_1 = arith.constant 0 : i32
    return %c0_i32, %c0_i32_0 : i32, i32
  }
  func.func @transform_4(%arg0: i32) -> (i32, i32) {
    %c0_i32 = arith.constant 0 : i32
    %c0_i32_0 = arith.constant 0 : i32
    %c0_i32_1 = arith.constant 0 : i32
    return %c0_i32, %c0_i32_0 : i32, i32
  }
  func.func @transform_5(%arg0: i32) -> (i32, i32) {
    %c0_i32 = arith.constant 0 : i32
    %c0_i32_0 = arith.constant 0 : i32
    return %arg0, %c0_i32 : i32, i32
  }
}

</mosaic_0001>

<bundles_post_ra>
// kernel: feed_forward.1
= control target key start
LH: loop header
LB: loop body
LE: loop exit
PB: predicated region body
PF: predicated region fallthrough
CT: control target
= control target key end

     0   :  { %vm56_vm0 = vcmask 261120   ;;  %vm336_vm1 = vcmask 523264   ;;  %s990_s1 = inlined_call_operand.vmem [shape: f32[32,64], index: 1, kind: input, shape index: {}]   ;;  %s991_s0 = inlined_call_operand.vmem [shape: f32[128,32], index: 0, kind: input, shape index: {}]   ;;  %s992_s3 = inlined_call_operand.vmem [shape: f32[64,128], index: 3, kind: input, shape index: {}]   ;;  %s993_s2 = inlined_call_operand.vmem [shape: f32[1,64], index: 2, kind: input, shape index: {}]   ;;  %s994_s4 = inlined_call_operand.vmem [shape: f32[1,128], index: 4, kind: input, shape index: {}]   ;;  %s995_s5 = inlined_call_operand.vmem [shape: f32[128,128], index: 5, kind: output, shape index: {}]  }
   0x1   :  { %v39_v0 = vld [vmem:[%s990_s1 + $0x18] sm:$0xff]  ;;  %v38_v1 = vld [vmem:[%s990_s1 + $0x10] sm:$0xff]  ;;  %v20_v2 = vld [vmem:[%s991_s0] sm:$0xff] }
   0x2   :  { %628 = vmatprep.subr.mxu0 %v39_v0  ;;  %v37_v3 = vld [vmem:[%s990_s1 + $0x8] sm:$0xff]  ;;  %636 = vmatprep.mubr.msk.f32.mxu0 %vm56_vm0, %v20_v2  ;;  %v36_v4 = vld [vmem:[%s990_s1] sm:$0xff]  ;;  %v22_v6 = vld [vmem:[%s991_s0 + $0x10] sm:$0xff] }
   0x3   :  { %629 = vmatpush3.msra.mxu0 %v39_v0  ;;  %v21_v5 = vld [vmem:[%s991_s0 + $0x8] sm:$0xff]  ;;  %v23_v7 = vld [vmem:[%s991_s0 + $0x18] sm:$0xff]  ;;  %v24_v8 = vld [vmem:[%s991_s0 + $0x20] sm:$0xff] }
   0x4   :  { %630 = vmatprep.subr.mxu0 %v38_v1  ;;  %v25_v9 = vld [vmem:[%s991_s0 + $0x28] sm:$0xff]  ;;  %v26_v10 = vld [vmem:[%s991_s0 + $0x30] sm:$0xff]  ;;  %v27_v11 = vld [vmem:[%s991_s0 + $0x38] sm:$0xff] }
   0x5   :  { %631 = vmatpush3.msra.mxu0 %v38_v1  ;;  %v28_v12 = vld [vmem:[%s991_s0 + $0x40] sm:$0xff]  ;;  %v29_v13 = vld [vmem:[%s991_s0 + $0x48] sm:$0xff]  ;;  %v30_v14 = vld [vmem:[%s991_s0 + $0x50] sm:$0xff] }
   0x6   :  { %632 = vmatprep.subr.mxu0 %v37_v3  ;;  %v31_v15 = vld [vmem:[%s991_s0 + $0x58] sm:$0xff]  ;;  %v32_v16 = vld [vmem:[%s991_s0 + $0x60] sm:$0xff]  ;;  %v33_v17 = vld [vmem:[%s991_s0 + $0x68] sm:$0xff] }
   0x7   :  { %633 = vmatpush3.msra.mxu0 %v37_v3  ;;  %v34_v18 = vld [vmem:[%s991_s0 + $0x70] sm:$0xff]  ;;  %v35_v19 = vld [vmem:[%s991_s0 + $0x78] sm:$0xff]  ;;  %v45_v22 = vld [vmem:[%s992_s3 + $0x28] sm:$0xff] }
   0x8   :  { %634 = vmatprep.subr.mxu0 %v36_v4  ;;  %v47_v20 = vld [vmem:[%s992_s3 + $0x38] sm:$0xff]  ;;  %v46_v21 = vld [vmem:[%s992_s3 + $0x30] sm:$0xff]  ;;  %v44_v23 = vld [vmem:[%s992_s3 + $0x20] sm:$0xff] }
   0x9   :  { %635 = vmatpush3.msra.mxu0 %v36_v4  ;;  %700 = vmatprep.subr.mxu1 %v47_v20  ;;  %v43_v24 = vld [vmem:[%s992_s3 + $0x18] sm:$0xff]  ;;  %v42_v25 = vld [vmem:[%s992_s3 + $0x10] sm:$0xff]  ;;  %v41_v26 = vld [vmem:[%s992_s3 + $0x8] sm:$0xff] }
   0xa   :  { %637 = vmatmul.mubr.msk.f32.vlgmr.msra.gmra.mxu0 %vm56_vm0, %v21_v5  ;;  %660 = vmatprep.subr.mxu0 %v47_v20  ;;  %v40_v27 = vld [vmem:[%s992_s3] sm:$0xff] }
   0xb   :  { %639 = vmatprep.mubr.msk.f32.mxu0 %vm56_vm0, %v22_v6  ;;  %661 = vmatpush3.msra.mxu0 %v47_v20  ;;  %v881_v28 = vld [vmem:[%s993_s2] ss:$0 sm:$0xff] }
   0xc   :  { %708 = vmatpush3.msra.mxu1 %v47_v20  ;;  %662 = vmatprep.subr.mxu0 %v46_v21 }
   0xd   :  { %701 = vmatprep.subr.mxu1 %v46_v21  ;;  %663 = vmatpush3.msra.mxu0 %v46_v21 }
   0xe   :  { %640 = vmatmul.mubr.msk.f32.gmra.mxu0 %vm56_vm0, %v23_v7  ;;  %709 = vmatpush3.msra.mxu1 %v46_v21 }
   0xf   :  { %642 = vmatprep.mubr.msk.f32.mxu0 %vm56_vm0, %v24_v8  ;;  %664 = vmatprep.subr.mxu0 %v45_v22 }
  0x10   :  { %702 = vmatprep.subr.mxu1 %v45_v22  ;;  %665 = vmatpush3.msra.mxu0 %v45_v22 }
  0x11   :  { %710 = vmatpush3.msra.mxu1 %v45_v22  ;;  %666 = vmatprep.subr.mxu0 %v44_v23 }
  0x12   :  { %643 = vmatmul.mubr.msk.f32.gmra.mxu0 %vm56_vm0, %v25_v9  ;;  %703 = vmatprep.subr.mxu1 %v44_v23 }
  0x13   :  { %645 = vmatprep.mubr.msk.f32.mxu0 %vm56_vm0, %v26_v10  ;;  %667 = vmatpush3.msra.mxu0 %v44_v23 }
  0x14   :  { %711 = vmatpush3.msra.mxu1 %v44_v23  ;;  %668 = vmatprep.subr.mxu0 %v43_v24 }
  0x15   :  { %704 = vmatprep.subr.mxu1 %v43_v24  ;;  %669 = vmatpush3.msra.mxu0 %v43_v24 }
  0x16   :  { %646 = vmatmul.mubr.msk.f32.gmra.mxu0 %vm56_vm0, %v27_v11  ;;  %712 = vmatpush3.msra.mxu1 %v43_v24 }
  0x17   :  { %648 = vmatprep.mubr.msk.f32.mxu0 %vm56_vm0, %v28_v12  ;;  %670 = vmatprep.subr.mxu0 %v42_v25 }
  0x18   :  { %705 = vmatprep.subr.mxu1 %v42_v25  ;;  %671 = vmatpush3.msra.mxu0 %v42_v25 }
  0x19   :  { %713 = vmatpush3.msra.mxu1 %v42_v25  ;;  %672 = vmatprep.subr.mxu0 %v41_v26 }
  0x1a   :  { %649 = vmatmul.mubr.msk.f32.gmra.mxu0 %vm56_vm0, %v29_v13  ;;  %706 = vmatprep.subr.mxu1 %v41_v26 }
  0x1b   :  { %651 = vmatprep.mubr.msk.f32.mxu0 %vm56_vm0, %v30_v14  ;;  %673 = vmatpush3.msra.mxu0 %v41_v26 }
  0x1c   :  { %714 = vmatpush3.msra.mxu1 %v41_v26  ;;  %674 = vmatprep.subr.mxu0 %v40_v27 }
  0x1d   :  { %707 = vmatprep.subr.mxu1 %v40_v27  ;;  %675 = vmatpush3.msra.mxu0 %v40_v27 }
  0x1e   :  { %652 = vmatmul.mubr.msk.f32.gmra.mxu0 %vm56_vm0, %v31_v15  ;;  %715 = vmatpush3.msra.mxu1 %v40_v27 }
  0x1f   :  { %654 = vmatprep.mubr.msk.f32.mxu0 %vm56_vm0, %v32_v16 }
  0x22   :  { %655 = vmatmul.mubr.msk.f32.gmra.mxu0 %vm56_vm0, %v33_v17 }
  0x23   :  { %657 = vmatprep.mubr.msk.f32.mxu0 %vm56_vm0, %v34_v18 }
  0x26   :  { %658 = vmatmul.mubr.msk.f32.gmra.mxu0 %vm56_vm0, %v35_v19 }
  0xca   :  { %v638_v29 = vpop.f32.mrf.mxu0 }
  0xcb   :  { %v177_v30 = vadd.f32 %v638_v29, %v881_v28 }
  0xcc   :  { %v171_v31 = vpop.f32.mrf.mxu0 }
  0xcd   :  { %v267_v32 = vmul.f32 0.70710677, %v177_v30  ;;  %v172_v33 = vadd.f32 %v881_v28, %v171_v31  ;;  %v251_v2 = vmul.f32 0.5, %v177_v30 }
  0xce   :  { %v641_v34 = vpop.f32.mrf.mxu0 }
  0xcf   :  { %716 = verf.f32 %v267_v32  ;;  %v266_v35 = vmul.f32 0.70710677, %v172_v33  ;;  %v187_v36 = vadd.f32 %v641_v34, %v881_v28  ;;  %v250_v62 = vmul.f32 0.5, %v172_v33 }
  0xd0   :  { %v181_v37 = vpop.f32.mrf.mxu0 }
  0xd1   :  { %718 = verf.f32 %v266_v35  ;;  %v269_v38 = vmul.f32 0.70710677, %v187_v36  ;;  %v182_v39 = vadd.f32 %v881_v28, %v181_v37  ;;  %v253_v18 = vmul.f32 0.5, %v187_v36 }
  0xd2   :  { %v644_v40 = vpop.f32.mrf.mxu0 }
  0xd3   :  { %720 = verf.f32 %v269_v38  ;;  %v268_v41 = vmul.f32 0.70710677, %v182_v39  ;;  %v888_v42 = vadd.f32 %v644_v40, %v881_v28  ;;  %v252_v15 = vmul.f32 0.5, %v182_v39 }
  0xd4   :  { %v191_v43 = vpop.f32.mrf.mxu0 }
  0xd5   :  { %722 = verf.f32 %v268_v41  ;;  %v271_v44 = vmul.f32 0.70710677, %v888_v42  ;;  %v192_v45 = vadd.f32 %v881_v28, %v191_v43  ;;  %v255_v33 = vmul.f32 0.5, %v888_v42 }
  0xd6   :  { %v647_v46 = vpop.f32.mrf.mxu0 }
  0xd7   :  { %724 = verf.f32 %v271_v44  ;;  %v270_v47 = vmul.f32 0.70710677, %v192_v45  ;;  %v893_v48 = vadd.f32 %v647_v46, %v881_v28  ;;  %v254_v22 = vmul.f32 0.5, %v192_v45 }
  0xd8   :  { %v201_v49 = vpop.f32.mrf.mxu0 }
  0xd9   :  { %726 = verf.f32 %v270_v47  ;;  %v273_v50 = vmul.f32 0.70710677, %v893_v48  ;;  %v202_v51 = vadd.f32 %v881_v28, %v201_v49  ;;  %v257_v45 = vmul.f32 0.5, %v893_v48 }
  0xda   :  { %v650_v52 = vpop.f32.mrf.mxu0 }
  0xdb   :  { %728 = verf.f32 %v273_v50  ;;  %v272_v53 = vmul.f32 0.70710677, %v202_v51  ;;  %v898_v54 = vadd.f32 %v650_v52, %v881_v28  ;;  %v256_v37 = vmul.f32 0.5, %v202_v51 }
  0xdc   :  { %v717_v55 = vpop.eup %716  ;;  %v211_v56 = vpop.f32.mrf.mxu0 }
  0xdd   :  { %730 = verf.f32 %v272_v53  ;;  %v275_v57 = vmul.f32 0.70710677, %v898_v54  ;;  %v299_v59 = vadd.f32 1.0, %v717_v55  ;;  %v902_v60 = vadd.f32 %v881_v28, %v211_v56 }
  0xde   :  { %v719_v58 = vpop.eup %718  ;;  %v653_v61 = vpop.f32.mrf.mxu0  ;;  %v259_v52 = vmul.f32 0.5, %v898_v54 }
  0xdf   :  { %v298_v63 = vadd.f32 1.0, %v719_v58  ;;  %732 = verf.f32 %v275_v57  ;;  %v905_v0 = vadd.f32 %v653_v61, %v881_v28  ;;  %v274_v3 = vmul.f32 0.70710677, %v902_v60 }
  0xe0   :  { %v721_v1 = vpop.eup %720  ;;  %v221_v4 = vpop.f32.mrf.mxu0  ;;  %v315_v8 = vmul.f32 %v299_v59, %v251_v2  ;;  %v258_v50 = vmul.f32 0.5, %v902_v60 }
  0xe1   :  { %v314_v5 = vmul.f32 %v298_v63, %v250_v62  ;;  %v277_v6 = vmul.f32 0.70710677, %v905_v0  ;;  %734 = verf.f32 %v274_v3  ;;  %v222_v9 = vadd.f32 %v881_v28, %v221_v4 }
  0xe2   :  { %v723_v7 = vpop.eup %722  ;;  %v656_v10 = vpop.f32.mrf.mxu0  ;;  %v301_v11 = vadd.f32 1.0, %v721_v1  ;;  %v261_v61 = vmul.f32 0.5, %v905_v0 }
  0xe3   :  { %736 = verf.f32 %v277_v6  ;;  %v911_v12 = vadd.f32 %v656_v10, %v881_v28  ;;  %676 = vmatprep.mubr.msk.f32.mxu0 %vm336_vm1, %v314_v5  ;;  %v300_v13 = vadd.f32 1.0, %v723_v7  ;;  %v276_v16 = vmul.f32 0.70710677, %v222_v9 }
  0xe4   :  { %v725_v14 = vpop.eup %724  ;;  %v231_v17 = vpop.f32.mrf.mxu0  ;;  %677 = vmatmul.mubr.msk.f32.vlgmr.msra.gmra.mxu0 %vm336_vm1, %v315_v8  ;;  %v317_v25 = vmul.f32 %v301_v11, %v253_v18  ;;  %v260_v58 = vmul.f32 0.5, %v222_v9 }
  0xe5   :  { %v279_v19 = vmul.f32 0.70710677, %v911_v12  ;;  %v232_v20 = vadd.f32 %v881_v28, %v231_v17  ;;  %738 = verf.f32 %v276_v16  ;;  %v316_v24 = vmul.f32 %v300_v13, %v252_v15 }
  0xe6   :  { %v727_v21 = vpop.eup %726  ;;  %v659_v23 = vpop.f32.mrf.mxu0  ;;  %v303_v26 = vadd.f32 1.0, %v725_v14  ;;  %v263_v4 = vmul.f32 0.5, %v911_v12  ;;  %v567_v12 = vld [vmem:[%s994_s4] ss:$0 sm:$0xff] }
  0xe7   :  { %v302_v27 = vadd.f32 1.0, %v727_v21  ;;  %740 = verf.f32 %v279_v19  ;;  %v278_v30 = vmul.f32 0.70710677, %v232_v20  ;;  %v247_v31 = vadd.f32 %v659_v23, %v881_v28  ;;  %679 = vmatprep.mubr.msk.f32.mxu1 %vm336_vm1, %v316_v24 }
  0xe8   :  { %v729_v29 = vpop.eup %728  ;;  %v241_v32 = vpop.f32.mrf.mxu0  ;;  %680 = vmatmul.mubr.msk.f32.vlgmr.msra.gmra.mxu1 %vm336_vm1, %v317_v25  ;;  %v319_v39 = vmul.f32 %v303_v26, %v255_v33  ;;  %v262_v54 = vmul.f32 0.5, %v232_v20 }
  0xe9   :  { %v318_v34 = vmul.f32 %v302_v27, %v254_v22  ;;  %v242_v35 = vadd.f32 %v881_v28, %v241_v32  ;;  %742 = verf.f32 %v278_v30  ;;  %v281_v38 = vmul.f32 0.70710677, %v247_v31 }
  0xea   :  { %v731_v36 = vpop.eup %730  ;;  %v305_v40 = vadd.f32 1.0, %v729_v29  ;;  %v265_v10 = vmul.f32 0.5, %v247_v31 }
  0xeb   :  { %v304_v41 = vadd.f32 1.0, %v731_v36  ;;  %v280_v43 = vmul.f32 0.70710677, %v242_v35  ;;  %682 = vmatprep.mubr.msk.f32.mxu1 %vm336_vm1, %v318_v34  ;;  %744 = verf.f32 %v281_v38  ;;  %v264_v0 = vmul.f32 0.5, %v242_v35 }
  0xec   :  { %v733_v44 = vpop.eup %732  ;;  %683 = vmatmul.mubr.msk.f32.gmra.mxu1 %vm336_vm1, %v319_v39  ;;  %v321_v46 = vmul.f32 %v305_v40, %v257_v45 }
  0xed   :  { %v320_v42 = vmul.f32 %v304_v41, %v256_v37  ;;  %746 = verf.f32 %v280_v43  ;;  %v307_v47 = vadd.f32 1.0, %v733_v44 }
  0xee   :  { %v735_v28 = vpop.eup %734 }
  0xef   :  { %685 = vmatprep.mubr.msk.f32.mxu1 %vm336_vm1, %v320_v42  ;;  %v306_v51 = vadd.f32 1.0, %v735_v28  ;;  %v323_v48 = vmul.f32 %v307_v47, %v259_v52 }
  0xf0   :  { %v737_v49 = vpop.eup %736  ;;  %686 = vmatmul.mubr.msk.f32.gmra.mxu1 %vm336_vm1, %v321_v46 }
  0xf1   :  { %v322_v53 = vmul.f32 %v306_v51, %v258_v50  ;;  %v309_v56 = vadd.f32 1.0, %v737_v49 }
  0xf2   :  { %v739_v55 = vpop.eup %738 }
  0xf3   :  { %v308_v59 = vadd.f32 1.0, %v739_v55  ;;  %688 = vmatprep.mubr.msk.f32.mxu1 %vm336_vm1, %v322_v53  ;;  %v325_v63 = vmul.f32 %v309_v56, %v261_v61 }
  0xf4   :  { %v741_v57 = vpop.eup %740  ;;  %689 = vmatmul.mubr.msk.f32.gmra.mxu1 %vm336_vm1, %v323_v48 }
  0xf5   :  { %v324_v62 = vmul.f32 %v308_v59, %v260_v58  ;;  %v311_v1 = vadd.f32 1.0, %v741_v57 }
  0xf6   :  { %v743_v60 = vpop.eup %742 }
  0xf7   :  { %v310_v2 = vadd.f32 1.0, %v743_v60  ;;  %691 = vmatprep.mubr.msk.f32.mxu1 %vm336_vm1, %v324_v62  ;;  %v327_v7 = vmul.f32 %v311_v1, %v263_v4 }
  0xf8   :  { %v745_v3 = vpop.eup %744  ;;  %692 = vmatmul.mubr.msk.f32.gmra.mxu1 %vm336_vm1, %v325_v63 }
  0xf9   :  { %v326_v6 = vmul.f32 %v310_v2, %v262_v54  ;;  %v313_v8 = vadd.f32 1.0, %v745_v3 }
  0xfa   :  { %v747_v5 = vpop.eup %746 }
  0xfb   :  { %v312_v9 = vadd.f32 1.0, %v747_v5  ;;  %694 = vmatprep.mubr.msk.f32.mxu1 %vm336_vm1, %v326_v6  ;;  %v329_v13 = vmul.f32 %v313_v8, %v265_v10 }
  0xfc   :  { %695 = vmatmul.mubr.msk.f32.gmra.mxu1 %vm336_vm1, %v327_v7 }
  0xfd   :  { %v328_v11 = vmul.f32 %v312_v9, %v264_v0 }
  0xff   :  { %697 = vmatprep.mubr.msk.f32.mxu1 %vm336_vm1, %v328_v11 }
 0x100   :  { %698 = vmatmul.mubr.msk.f32.gmra.mxu1 %vm336_vm1, %v329_v13 }
 0x1a4   :  { %v678_v14 = vpop.f32.mrf.mxu0 }
 0x1a5   :  { %v457_v15 = vadd.f32 %v678_v14, %v567_v12 }
 0x1a6   :  { %v451_v16 = vpop.f32.mrf.mxu0 }
 0x1a7   :  { %531 = vst [vmem:[%s995_s5 + $0x8] sm:$0xff] %v457_v15  ;;  %v452_v17 = vadd.f32 %v567_v12, %v451_v16 }
 0x1a8   :  { %v681_v18 = vpop.f32.mrf.mxu1 }
 0x1a9   :  { %530 = vst [vmem:[%s995_s5] sm:$0xff] %v452_v17  ;;  %v467_v19 = vadd.f32 %v681_v18, %v567_v12 }
 0x1aa   :  { %v461_v20 = vpop.f32.mrf.mxu1 }
 0x1ab   :  { %533 = vst [vmem:[%s995_s5 + $0x18] sm:$0xff] %v467_v19  ;;  %v462_v21 = vadd.f32 %v567_v12, %v461_v20 }
 0x1ac   :  { %v684_v22 = vpop.f32.mrf.mxu1 }
 0x1ad   :  { %532 = vst [vmem:[%s995_s5 + $0x10] sm:$0xff] %v462_v21  ;;  %v477_v23 = vadd.f32 %v684_v22, %v567_v12 }
 0x1ae   :  { %v471_v24 = vpop.f32.mrf.mxu1 }
 0x1af   :  { %535 = vst [vmem:[%s995_s5 + $0x28] sm:$0xff] %v477_v23  ;;  %v472_v25 = vadd.f32 %v567_v12, %v471_v24 }
 0x1b0   :  { %v687_v26 = vpop.f32.mrf.mxu1 }
 0x1b1   :  { %534 = vst [vmem:[%s995_s5 + $0x20] sm:$0xff] %v472_v25  ;;  %v487_v27 = vadd.f32 %v687_v26, %v567_v12 }
 0x1b2   :  { %v481_v29 = vpop.f32.mrf.mxu1 }
 0x1b3   :  { %537 = vst [vmem:[%s995_s5 + $0x38] sm:$0xff] %v487_v27  ;;  %v482_v30 = vadd.f32 %v567_v12, %v481_v29 }
 0x1b4   :  { %v690_v31 = vpop.f32.mrf.mxu1 }
 0x1b5   :  { %536 = vst [vmem:[%s995_s5 + $0x30] sm:$0xff] %v482_v30  ;;  %v497_v32 = vadd.f32 %v690_v31, %v567_v12 }
 0x1b6   :  { %v491_v33 = vpop.f32.mrf.mxu1 }
 0x1b7   :  { %539 = vst [vmem:[%s995_s5 + $0x48] sm:$0xff] %v497_v32  ;;  %v492_v34 = vadd.f32 %v567_v12, %v491_v33 }
 0x1b8   :  { %v693_v35 = vpop.f32.mrf.mxu1 }
 0x1b9   :  { %538 = vst [vmem:[%s995_s5 + $0x40] sm:$0xff] %v492_v34  ;;  %v507_v36 = vadd.f32 %v693_v35, %v567_v12 }
 0x1ba   :  { %v501_v37 = vpop.f32.mrf.mxu1 }
 0x1bb   :  { %541 = vst [vmem:[%s995_s5 + $0x58] sm:$0xff] %v507_v36  ;;  %v502_v38 = vadd.f32 %v567_v12, %v501_v37 }
 0x1bc   :  { %v696_v39 = vpop.f32.mrf.mxu1 }
 0x1bd   :  { %540 = vst [vmem:[%s995_s5 + $0x50] sm:$0xff] %v502_v38  ;;  %v517_v40 = vadd.f32 %v696_v39, %v567_v12 }
 0x1be   :  { %v511_v41 = vpop.f32.mrf.mxu1 }
 0x1bf   :  { %543 = vst [vmem:[%s995_s5 + $0x68] sm:$0xff] %v517_v40  ;;  %v512_v43 = vadd.f32 %v567_v12, %v511_v41 }
 0x1c0   :  { %v699_v44 = vpop.f32.mrf.mxu1 }
 0x1c1   :  { %542 = vst [vmem:[%s995_s5 + $0x60] sm:$0xff] %v512_v43  ;;  %v527_v45 = vadd.f32 %v699_v44, %v567_v12 }
 0x1c2   :  { %v521_v42 = vpop.f32.mrf.mxu1 }
 0x1c3   :  { %545 = vst [vmem:[%s995_s5 + $0x78] sm:$0xff] %v527_v45  ;;  %v522_v28 = vadd.f32 %v567_v12, %v521_v42 }
 0x1c5   :  { %544 = vst [vmem:[%s995_s5 + $0x70] sm:$0xff] %v522_v28 }

</bundles_post_ra>
